<compile_context>
chip_gen: v5e
topology: v5e:2x2
jax: 0.10.0
libtpu: 0.0.40
codegen_flags: <defaults>
</compile_context>

<pallas_src>
import jax
import jax.numpy as jnp
from jax.experimental import pallas as pl
from jax.experimental.pallas import tpu as pltpu

IN_DIM, H1, H2, OUT_DIM = 48, 200, 128, 4
H1_PAD = 256  # hidden 200 zero-padded to a full 256 lanes (math identical)


def _round_up(n, m):
    return pl.cdiv(n, m) * m


def _mlp_kernel(x_ref, w1_ref, b1_ref, w2_ref, b2_ref, w3_ref, b3_ref, o_ref):
    # Biases read once in f32; matmul operands are bf16, accumulation is f32.
    b1 = b1_ref[...]
    b2 = b2_ref[...]
    b3 = b3_ref[...]

    x = x_ref[...]  # bf16 [bb, 48]

    # fc1 + ReLU  (bias add / ReLU kept in f32 -> no bf16 VPU ops; v5e-safe)
    h = jnp.dot(x, w1_ref[...], preferred_element_type=jnp.float32) + b1
    h = jnp.maximum(h, 0.0)

    # fc2 + ReLU
    h = jnp.dot(h.astype(jnp.bfloat16), w2_ref[...],
                preferred_element_type=jnp.float32) + b2
    h = jnp.maximum(h, 0.0)

    # fc3 (no activation)
    out = jnp.dot(h.astype(jnp.bfloat16), w3_ref[...],
                  preferred_element_type=jnp.float32) + b3
    o_ref[...] = out.astype(o_ref.dtype)


def _prepare_params(params):
    """Pad hidden 200->256 with zeros (identical math) and cast weights to bf16."""
    w1, b1, w2, b2, w3, b3 = params
    pad1 = H1_PAD - H1
    w1p = jnp.pad(w1, ((0, 0), (0, pad1))).astype(jnp.bfloat16)   # (48, 256)
    b1p = jnp.pad(b1, ((0, 0), (0, pad1))).astype(jnp.float32)    # (1, 256)
    w2p = jnp.pad(w2, ((0, pad1), (0, 0))).astype(jnp.bfloat16)   # (256, 128)
    b2p = b2.astype(jnp.float32)                                  # (1, 128)
    w3p = w3.astype(jnp.bfloat16)                                 # (128, 4)
    b3p = b3.astype(jnp.float32)                                  # (1, 4)
    return w1p, b1p, w2p, b2p, w3p, b3p


def blac_angle_forward(x, params, *, block_b=512):
    """x: [B, 48] float32 -> [B, 4] float32 (fc1 -> ReLU -> fc2 -> ReLU -> fc3)."""
    B = x.shape[0]

    # MXU-aligned batch tile (multiple of 256 covers both the 256x256 MXU on v6e/v7x
    # and the 128x128 MXU on v5e), but never much larger than the batch itself.
    bb = _round_up(min(block_b, _round_up(B, 256)), 256)
    B_pad = _round_up(B, bb)
    # Keep >= 2 parallel grid steps when possible so v7x's second TensorCore is used.
    if B_pad // bb == 1 and bb > 256:
        bb //= 2
    grid = (B_pad // bb,)

    if B_pad != B:
        x = jnp.pad(x, ((0, B_pad - B), (0, 0)))
    x = x.astype(jnp.bfloat16)

    w1p, b1p, w2p, b2p, w3p, b3p = _prepare_params(params)

    out = pl.pallas_call(
        _mlp_kernel,
        out_shape=jax.ShapeDtypeStruct((B_pad, OUT_DIM), jnp.float32),
        grid_spec=pltpu.PrefetchScalarGridSpec(
            num_scalar_prefetch=0,
            grid=grid,
            in_specs=[
                pl.BlockSpec((bb, IN_DIM), lambda i: (i, 0)),      # x tile
                pl.BlockSpec((IN_DIM, H1_PAD), lambda i: (0, 0)),  # w1 (VMEM-resident)
                pl.BlockSpec((1, H1_PAD), lambda i: (0, 0)),       # b1
                pl.BlockSpec((H1_PAD, H2), lambda i: (0, 0)),      # w2
                pl.BlockSpec((1, H2), lambda i: (0, 0)),           # b2
                pl.BlockSpec((H2, OUT_DIM), lambda i: (0, 0)),     # w3
                pl.BlockSpec((1, OUT_DIM), lambda i: (0, 0)),      # b3
            ],
            out_specs=pl.BlockSpec((bb, OUT_DIM), lambda i: (i, 0)),
        ),
        compiler_params=pltpu.CompilerParams(
            dimension_semantics=("parallel",),
        ),
    )(x, w1p, b1p, w2p, b2p, w3p, b3p)

    return out[:B]


def init_params(key):
    """Deterministic init matching nn.Linear shapes (weights stored as (in, out))."""
    ks = jax.random.split(key, 6)

    def linear(kw, kb, fan_in, fan_out):
        # PyTorch-style uniform(-1/sqrt(fan_in), 1/sqrt(fan_in))
        bound = 1.0 / jnp.sqrt(jnp.float32(fan_in))
        w = jax.random.uniform(kw, (fan_in, fan_out), jnp.float32, -bound, bound)
        b = jax.random.uniform(kb, (1, fan_out), jnp.float32, -bound, bound)
        return w, b

    w1, b1 = linear(ks[0], ks[1], IN_DIM, H1)
    w2, b2 = linear(ks[2], ks[3], H1, H2)
    w3, b3 = linear(ks[4], ks[5], H2, OUT_DIM)
    return (w1, b1, w2, b2, w3, b3)


def reference_forward(x, params):
    """Pure-JAX reference mirroring the kernel's math: bf16 operands, f32 accumulation."""
    w1, b1, w2, b2, w3, b3 = params

    def lin(h, w, b):
        return jnp.dot(h.astype(jnp.bfloat16), w.astype(jnp.bfloat16),
                       preferred_element_type=jnp.float32) + b

    h = jnp.maximum(lin(x, w1, b1), 0.0)
    h = jnp.maximum(lin(h, w2, b2), 0.0)
    return lin(h, w3, b3)


if __name__ == "__main__":
    key = jax.random.PRNGKey(0)
    k_param, k_x = jax.random.split(key)

    params = init_params(k_param)
    B = 16  # small, deliberately NOT a multiple of the tile -> exercises padding path
    x = jax.random.normal(k_x, (B, IN_DIM), jnp.float32)

    out = blac_angle_forward(x, params)
    out = jax.block_until_ready(out)

    ref = reference_forward(x, params)
    assert out.shape == (B, OUT_DIM)
    assert jnp.allclose(out, ref, atol=1e-3, rtol=1e-3), "mismatch vs JAX reference"

    print("KERNEL_OK")
</pallas_src>

<mosaic_0001>
module attributes {stable_mosaic.version = 11 : i64} {
  func.func @_mlp_kernel(%arg0: i32, %arg1: memref<256x48xbf16, #tpu.memory_space<vmem>>, %arg2: memref<48x256xbf16, #tpu.memory_space<vmem>>, %arg3: memref<1x256xf32, #tpu.memory_space<vmem>>, %arg4: memref<256x128xbf16, #tpu.memory_space<vmem>>, %arg5: memref<1x128xf32, #tpu.memory_space<vmem>>, %arg6: memref<128x4xbf16, #tpu.memory_space<vmem>>, %arg7: memref<1x4xf32, #tpu.memory_space<vmem>>, %arg8: memref<256x4xf32, #tpu.memory_space<vmem>>) attributes {dimension_semantics = [#tpu.dimension_semantics<parallel>], iteration_bounds = array<i64: 1>, scalar_prefetch = 0 : i64, scratch_operands = 0 : i64, tpu.core_type = #tpu.core_type<tc>, window_params = [{transform_indices = @transform_0, window_bounds = array<i64: 256, 48>}, {pipeline_mode = #tpu.pipeline_mode<synchronous>, transform_indices = @transform_1, window_bounds = array<i64: 48, 256>}, {pipeline_mode = #tpu.pipeline_mode<synchronous>, transform_indices = @transform_2, window_bounds = array<i64: 1, 256>}, {pipeline_mode = #tpu.pipeline_mode<synchronous>, transform_indices = @transform_3, window_bounds = array<i64: 256, 128>}, {pipeline_mode = #tpu.pipeline_mode<synchronous>, transform_indices = @transform_4, window_bounds = array<i64: 1, 128>}, {pipeline_mode = #tpu.pipeline_mode<synchronous>, transform_indices = @transform_5, window_bounds = array<i64: 128, 4>}, {pipeline_mode = #tpu.pipeline_mode<synchronous>, transform_indices = @transform_6, window_bounds = array<i64: 1, 4>}, {transform_indices = @transform_7, window_bounds = array<i64: 256, 4>}]} {
    %c0 = arith.constant 0 : index
    %c0_0 = arith.constant 0 : index
    %0 = vector.load %arg3[%c0, %c0_0] : memref<1x256xf32, #tpu.memory_space<vmem>>, vector<1x256xf32>
    %c0_1 = arith.constant 0 : index
    %c0_2 = arith.constant 0 : index
    %1 = vector.load %arg5[%c0_1, %c0_2] : memref<1x128xf32, #tpu.memory_space<vmem>>, vector<1x128xf32>
    %c0_3 = arith.constant 0 : index
    %c0_4 = arith.constant 0 : index
    %2 = vector.load %arg7[%c0_3, %c0_4] : memref<1x4xf32, #tpu.memory_space<vmem>>, vector<1x4xf32>
    %c0_5 = arith.constant 0 : index
    %c0_6 = arith.constant 0 : index
    %3 = vector.load %arg1[%c0_5, %c0_6] : memref<256x48xbf16, #tpu.memory_space<vmem>>, vector<256x48xbf16>
    %c0_7 = arith.constant 0 : index
    %c0_8 = arith.constant 0 : index
    %4 = vector.load %arg2[%c0_7, %c0_8] : memref<48x256xbf16, #tpu.memory_space<vmem>>, vector<48x256xbf16>
    %cst = arith.constant dense<0.000000e+00> : vector<256x256xf32>
    %5 = tpu.matmul %3, %4, %cst {dimension_numbers = #tpu.dot_dimension_numbers<[1], [0], [0], [1], [0, 0, 1, 1], [], []>} : vector<256x48xbf16>, vector<48x256xbf16>, vector<256x256xf32> -> vector<256x256xf32>
    %6 = vector.broadcast %0 : vector<1x256xf32> to vector<256x256xf32>
    %7 = arith.addf %5, %6 : vector<256x256xf32>
    %cst_9 = arith.constant 0.000000e+00 : f32
    %8 = vector.broadcast %cst_9 : f32 to vector<256x256xf32>
    %9 = arith.maximumf %7, %8 : vector<256x256xf32>
    %10 = arith.truncf %9 : vector<256x256xf32> to vector<256x256xbf16>
    %c0_10 = arith.constant 0 : index
    %c0_11 = arith.constant 0 : index
    %11 = vector.load %arg4[%c0_10, %c0_11] : memref<256x128xbf16, #tpu.memory_space<vmem>>, vector<256x128xbf16>
    %cst_12 = arith.constant dense<0.000000e+00> : vector<256x128xf32>
    %12 = tpu.matmul %10, %11, %cst_12 {dimension_numbers = #tpu.dot_dimension_numbers<[1], [0], [0], [1], [0, 0, 1, 1], [], []>} : vector<256x256xbf16>, vector<256x128xbf16>, vector<256x128xf32> -> vector<256x128xf32>
    %13 = vector.broadcast %1 : vector<1x128xf32> to vector<256x128xf32>
    %14 = arith.addf %12, %13 : vector<256x128xf32>
    %cst_13 = arith.constant 0.000000e+00 : f32
    %15 = vector.broadcast %cst_13 : f32 to vector<256x128xf32>
    %16 = arith.maximumf %14, %15 : vector<256x128xf32>
    %17 = arith.truncf %16 : vector<256x128xf32> to vector<256x128xbf16>
    %c0_14 = arith.constant 0 : index
    %c0_15 = arith.constant 0 : index
    %18 = vector.load %arg6[%c0_14, %c0_15] : memref<128x4xbf16, #tpu.memory_space<vmem>>, vector<128x4xbf16>
    %cst_16 = arith.constant dense<0.000000e+00> : vector<256x4xf32>
    %19 = tpu.matmul %17, %18, %cst_16 {dimension_numbers = #tpu.dot_dimension_numbers<[1], [0], [0], [1], [0, 0, 1, 1], [], []>} : vector<256x128xbf16>, vector<128x4xbf16>, vector<256x4xf32> -> vector<256x4xf32>
    %20 = vector.broadcast %2 : vector<1x4xf32> to vector<256x4xf32>
    %21 = arith.addf %19, %20 : vector<256x4xf32>
    %c0_17 = arith.constant 0 : index
    %c0_18 = arith.constant 0 : index
    %22 = vector.load %arg8[%c0_17, %c0_18] : memref<256x4xf32, #tpu.memory_space<vmem>>, vector<256x4xf32>
    tpu.vector_store %arg8[%c0_17, %c0_18], %21 {strides = array<i32>} : memref<256x4xf32, #tpu.memory_space<vmem>>, vector<256x4xf32>,
    return
  }
  func.func @transform_0(%arg0: i32) -> (i32, i32) {
    %c0_i32 = arith.constant 0 : i32
    %c0_i32_0 = arith.constant 0 : i32
    return %arg0, %c0_i32 : i32, i32
  }
  func.func @transform_1(%arg0: i32) -> (i32, i32) {
    %c0_i32 = arith.constant 0 : i32
    %c0_i32_0 = arith.constant 0 : i32
    %c0_i32_1 = arith.constant 0 : i32
    return %c0_i32, %c0_i32_0 : i32, i32
  }
  func.func @transform_2(%arg0: i32) -> (i32, i32) {
    %c0_i32 = arith.constant 0 : i32
    %c0_i32_0 = arith.constant 0 : i32
    %c0_i32_1 = arith.constant 0 : i32
    return %c0_i32, %c0_i32_0 : i32, i32
  }
  func.func @transform_3(%arg0: i32) -> (i32, i32) {
    %c0_i32 = arith.constant 0 : i32
    %c0_i32_0 = arith.constant 0 : i32
    %c0_i32_1 = arith.constant 0 : i32
    return %c0_i32, %c0_i32_0 : i32, i32
  }
  func.func @transform_4(%arg0: i32) -> (i32, i32) {
    %c0_i32 = arith.constant 0 : i32
    %c0_i32_0 = arith.constant 0 : i32
    %c0_i32_1 = arith.constant 0 : i32
    return %c0_i32, %c0_i32_0 : i32, i32
  }
  func.func @transform_5(%arg0: i32) -> (i32, i32) {
    %c0_i32 = arith.constant 0 : i32
    %c0_i32_0 = arith.constant 0 : i32
    %c0_i32_1 = arith.constant 0 : i32
    return %c0_i32, %c0_i32_0 : i32, i32
  }
  func.func @transform_6(%arg0: i32) -> (i32, i32) {
    %c0_i32 = arith.constant 0 : i32
    %c0_i32_0 = arith.constant 0 : i32
    %c0_i32_1 = arith.constant 0 : i32
    return %c0_i32, %c0_i32_0 : i32, i32
  }
  func.func @transform_7(%arg0: i32) -> (i32, i32) {
    %c0_i32 = arith.constant 0 : i32
    %c0_i32_0 = arith.constant 0 : i32
    return %arg0, %c0_i32 : i32, i32
  }
}

</mosaic_0001>

<bundles_post_ra>
// kernel: tpu_custom_call.1
= control target key start
LH: loop header
LB: loop body
LE: loop exit
PB: predicated region body
PF: predicated region fallthrough
CT: control target
= control target key end

     0   :  { %vm183_vm0 = vcmask 392192   ;;  %vm1019_vm1 = vcmask 31744   ;;  %s1928_s1 = inlined_call_operand.vmem [shape: bf16[48,256], index: 1, kind: input, shape index: {}]   ;;  %s1929_s0 = inlined_call_operand.vmem [shape: bf16[256,48], index: 0, kind: input, shape index: {}]   ;;  %s1930_s3 = inlined_call_operand.vmem [shape: bf16[256,128], index: 3, kind: input, shape index: {}]   ;;  %s1931_s2 = inlined_call_operand.vmem [shape: f32[1,256], index: 2, kind: input, shape index: {}]   ;;  %s1932_s4 = inlined_call_operand.vmem [shape: f32[1,128], index: 4, kind: input, shape index: {}]   ;;  %s1933_s5 = inlined_call_operand.vmem [shape: bf16[128,4], index: 5, kind: input, shape index: {}]   ;;  %s1934_s6 = inlined_call_operand.vmem [shape: f32[1,4], index: 6, kind: input, shape index: {}]   ;;  %s1935_s7 = inlined_call_operand.vmem [shape: f32[256,4], index: 7, kind: output, shape index: {}]  }
   0x1   :  { %v1138_v0 = vld [vmem:[%s1928_s1 + $0x20] sm:$0xf]  ;;  %v1293_v1 = vld [vmem:[%s1928_s1 + $0x24] sm:$0xf0]  ;;  %v1130_v2 = vld [vmem:[%s1928_s1 + $0x10] sm:$0xf] }
   0x2   :  { %v1139_v3 = vor.u32 %v1293_v1, %v1138_v0  ;;  %v1291_v4 = vld [vmem:[%s1928_s1 + $0x14] sm:$0xf0]  ;;  %v1122_v6 = vld [vmem:[%s1928_s1] sm:$0xf]  ;;  %v1289_v7 = vld [vmem:[%s1928_s1 + $0x4] sm:$0xf0] }
   0x3   :  { %v1131_v5 = vor.u32 %v1291_v4, %v1130_v2  ;;  %v1292_v8 = vld [vmem:[%s1928_s1 + $0x24] sm:$0xf]  ;;  %v1140_v9 = vld [vmem:[%s1928_s1 + $0x28] sm:$0xf0]  ;;  %v1123_v10 = vor.u32 %v1289_v7, %v1122_v6  ;;  %v1290_v12 = vld [vmem:[%s1928_s1 + $0x14] sm:$0xf] }
   0x4   :  { %237 = vmatpush.bf16.msra.mxu0 %v1139_v3  ;;  %1318 = vmatpush.bf16.msra.mxu1 %v1139_v3  ;;  %v1143_v11 = vor.u32 %v1292_v8, %v1140_v9  ;;  %v1132_v13 = vld [vmem:[%s1928_s1 + $0x18] sm:$0xf0]  ;;  %v1272_v14 = vld [vmem:[%s1929_s0] sm:$0xff]  ;;  %v1413_v15 = vld [vmem:[%s1929_s0 + $0x28] sm:$0xff] }
   0x5   :  { %1319 = vmatpush.bf16.msra.mxu2 %v1139_v3  ;;  %1320 = vmatpush.bf16.msra.mxu3 %v1139_v3  ;;  %v1135_v16 = vor.u32 %v1290_v12, %v1132_v13  ;;  %v1273_v17 = vld [vmem:[%s1929_s0 + $0x8] sm:$0xff]  ;;  %v1424_v18 = vld [vmem:[%s1929_s0 + $0x30] sm:$0xff]  ;;  %v1288_v19 = vld [vmem:[%s1928_s1 + $0x4] sm:$0xf] }
   0x6   :  { %v1124_v20 = vld [vmem:[%s1928_s1 + $0x8] sm:$0xf0]  ;;  %v1274_v22 = vld [vmem:[%s1929_s0 + $0x10] sm:$0xff]  ;;  %v1441_v23 = vld [vmem:[%s1929_s0 + $0x38] sm:$0xff] }
   0x7   :  { %v1127_v21 = vor.u32 %v1288_v19, %v1124_v20  ;;  %v1275_v24 = vld [vmem:[%s1929_s0 + $0x18] sm:$0xff]  ;;  %v1452_v25 = vld [vmem:[%s1929_s0 + $0x40] sm:$0xff]  ;;  %v1463_v27 = vld [vmem:[%s1929_s0 + $0x48] sm:$0xff] }
   0x8   :  { %238 = vmatpush.bf16.msra.mxu0 %v1131_v5  ;;  %1321 = vmatpush.bf16.msra.mxu1 %v1131_v5  ;;  %v1276_v26 = vld [vmem:[%s1929_s0 + $0x20] sm:$0xff]  ;;  %v1471_v28 = vld [vmem:[%s1929_s0 + $0x50] sm:$0xff]  ;;  %v1301_v29 = vld [vmem:[%s1930_s3 + $0x38] sm:$0xff] }
   0x9   :  { %1322 = vmatpush.bf16.msra.mxu2 %v1131_v5  ;;  %1323 = vmatpush.bf16.msra.mxu3 %v1131_v5  ;;  %v1300_v30 = vld [vmem:[%s1930_s3 + $0x30] sm:$0xff]  ;;  %v1485_v31 = vld [vmem:[%s1929_s0 + $0x58] sm:$0xff]  ;;  %v1299_v32 = vld [vmem:[%s1930_s3 + $0x28] sm:$0xff] }
   0xa   :  { %v1298_v33 = vld [vmem:[%s1930_s3 + $0x20] sm:$0xff]  ;;  %v1297_v34 = vld [vmem:[%s1930_s3 + $0x18] sm:$0xff]  ;;  %v1296_v35 = vld [vmem:[%s1930_s3 + $0x10] sm:$0xff] }
   0xb   :  { %v1295_v36 = vld [vmem:[%s1930_s3 + $0x8] sm:$0xff]  ;;  %v1294_v37 = vld [vmem:[%s1930_s3] sm:$0xff]  ;;  %v1309_v39 = vld [vmem:[%s1930_s3 + $0x78] sm:$0xff] }
   0xc   :  { %239 = vmatpush.bf16.msra.mxu0 %v1123_v10  ;;  %1324 = vmatpush.bf16.msra.mxu1 %v1123_v10  ;;  %v1512_v38 = vld [vmem:[%s1929_s0 + $0x60] sm:$0xff]  ;;  %v1531_v44 = vld [vmem:[%s1929_s0 + $0x68] sm:$0xff]  ;;  %v1308_v45 = vld [vmem:[%s1930_s3 + $0x70] sm:$0xff] }
   0xd   :  { %1325 = vmatpush.bf16.msra.mxu2 %v1123_v10  ;;  %1326 = vmatpush.bf16.msra.mxu3 %v1123_v10  ;;  %v1522_v40 = vld [vmem:[%s1931_s2] sm:$0x3]  ;;  %v1307_v58 = vld [vmem:[%s1930_s3 + $0x68] sm:$0xff]  ;;  %v1551_v61 = vld [vmem:[%s1929_s0 + $0x70] sm:$0xff] }
   0xe   :  { %v1525_v43 = vperm.slane %v1522_v40, 0  ;;  %v1306_v62 = vld [vmem:[%s1930_s3 + $0x60] sm:$0xff] }
   0xf   :  { %1144 = vmatmul.msk.bf16.vlgmr.msra.gmra.mxu0 %vm183_vm0, %v1272_v14  ;;  %1149 = vmatmul.msk.bf16.vlgmr.msra.gmra.mxu1 %vm183_vm0, %v1413_v15 }
  0x10   :  { %326 = vmatpush.bf16.msrb.mxu1 %v1143_v11  ;;  %1154 = vmatmul.msk.bf16.vlgmr.msra.gmra.mxu2 %vm183_vm0, %v1471_v28  ;;  %v1305_v11 = vld [vmem:[%s1930_s3 + $0x58] sm:$0xff] }
  0x11   :  { %637 = vmatpush.bf16.msrb.mxu2 %v1301_v29  ;;  %1156 = vmatmul.msk.bf16.vlgmr.msra.gmra.mxu3 %vm183_vm0, %v1512_v38 }
  0x12   :  { %726 = vmatpush.bf16.msrb.mxu3 %v1309_v39 }
  0x14   :  { %327 = vmatpush.bf16.msrb.mxu1 %v1135_v16  ;;  %v1304_v16 = vld [vmem:[%s1930_s3 + $0x50] sm:$0xff] }
  0x15   :  { %638 = vmatpush.bf16.msrb.mxu2 %v1300_v30 }
  0x16   :  { %727 = vmatpush.bf16.msrb.mxu3 %v1308_v45 }
  0x18   :  { %328 = vmatpush.bf16.msrb.mxu1 %v1127_v21 }
  0x19   :  { %639 = vmatpush.bf16.msrb.mxu2 %v1299_v32 }
  0x1a   :  { %728 = vmatpush.bf16.msrb.mxu3 %v1307_v58 }
  0x1d   :  { %640 = vmatpush.bf16.msrb.mxu2 %v1298_v33 }
  0x1e   :  { %729 = vmatpush.bf16.msrb.mxu3 %v1306_v62 }
  0x1f   :  { %1145 = vmatmul.msk.bf16.gmra.mxu0 %vm183_vm0, %v1273_v17  ;;  %1150 = vmatmul.msk.bf16.gmra.mxu1 %vm183_vm0, %v1424_v18 }
  0x20   :  { %1155 = vmatmul.msk.bf16.gmra.mxu2 %vm183_vm0, %v1485_v31 }
  0x21   :  { %641 = vmatpush.bf16.msrb.mxu2 %v1297_v34  ;;  %1157 = vmatmul.msk.bf16.gmra.mxu3 %vm183_vm0, %v1531_v44  ;;  %v1303_v34 = vld [vmem:[%s1930_s3 + $0x48] sm:$0xff] }
  0x22   :  { %730 = vmatpush.bf16.msrb.mxu3 %v1305_v11 }
  0x25   :  { %642 = vmatpush.bf16.msrb.mxu2 %v1296_v35 }
  0x26   :  { %731 = vmatpush.bf16.msrb.mxu3 %v1304_v16 }
  0x29   :  { %643 = vmatpush.bf16.msrb.mxu2 %v1295_v36 }
  0x2a   :  { %732 = vmatpush.bf16.msrb.mxu3 %v1303_v34 }
  0x2d   :  { %644 = vmatpush.bf16.msrb.mxu2 %v1294_v37  ;;  %v1302_v37 = vld [vmem:[%s1930_s3 + $0x40] sm:$0xff] }
  0x2e   :  { %733 = vmatpush.bf16.msrb.mxu3 %v1302_v37 }
  0x2f   :  { %1146 = vmatmul.msk.bf16.gmra.mxu0 %vm183_vm0, %v1274_v22  ;;  %1151 = vmatmul.msk.bf16.gmra.mxu1 %vm183_vm0, %v1441_v23 }
  0x31   :  { %1158 = vmatmul.msk.bf16.gmra.mxu3 %vm183_vm0, %v1551_v61 }
  0x3f   :  { %1147 = vmatmul.msk.bf16.gmra.mxu0 %vm183_vm0, %v1275_v24  ;;  %1152 = vmatmul.msk.bf16.gmra.mxu1 %vm183_vm0, %v1452_v25 }
  0x4f   :  { %1148 = vmatmul.msk.bf16.gmra.mxu0 %vm183_vm0, %v1276_v26  ;;  %1153 = vmatmul.msk.bf16.gmra.mxu1 %vm183_vm0, %v1463_v27 }
  0x5f   :  { %1160 = vmatmul.msk.bf16.vlgmr.msrb.gmra.mxu1 %vm183_vm0, %v1272_v14  ;;  %v1572_v14 = vld [vmem:[%s1929_s0 + $0x78] sm:$0xff] }
  0x60   :  { %1159 = vmatmul.msk.bf16.gmra.mxu3 %vm183_vm0, %v1572_v14 }
  0x6f   :  { %1161 = vmatmul.msk.bf16.gmra.mxu1 %vm183_vm0, %v1273_v17 }
  0x7f   :  { %1162 = vmatmul.msk.bf16.gmra.mxu1 %vm183_vm0, %v1274_v22 }
  0x8c   :  { %v241_v41 = vpop.f32.mrf.mxu0  ;;  %v266_v42 = vpop.f32.mrf.mxu1 }
  0x8d   :  { %v242_v46 = vadd.f32 %v241_v41, %v1525_v43  ;;  %v267_v47 = vadd.f32 %v266_v42, %v1525_v43 }
  0x8f   :  { %1163 = vmatmul.msk.bf16.gmra.mxu1 %vm183_vm0, %v1275_v24  ;;  %v410_v50 = vmax.f32 %v242_v46, 0.0  ;;  %v430_v53 = vmax.f32 %v267_v47, 0.0 }
  0x94   :  { %v243_v48 = vpop.f32.mrf.mxu0  ;;  %v268_v49 = vpop.f32.mrf.mxu1 }
  0x95   :  { %v244_v51 = vadd.f32 %v243_v48, %v1525_v43  ;;  %v269_v52 = vadd.f32 %v268_v49, %v1525_v43 }
  0x97   :  { %v412_v54 = vmax.f32 %v244_v51, 0.0  ;;  %v432_v55 = vmax.f32 %v269_v52, 0.0 }
  0x99   :  { %v474_v56 = vpack.c.bf16 %v412_v54, %v410_v50  ;;  %v1542_v57 = vpack.c.bf16 %v432_v55, %v430_v53 }
  0x9b   :  { %645 = vmatmul.bf16.vlgmr.msrb.gmra.mxu2 %v474_v56 }
  0x9c   :  { %v246_v59 = vpop.f32.mrf.mxu0  ;;  %v271_v60 = vpop.f32.mrf.mxu1 }
  0x9d   :  { %v247_v63 = vadd.f32 %v246_v59, %v1525_v43  ;;  %v272_v0 = vadd.f32 %v271_v60, %v1525_v43 }
  0x9f   :  { %1164 = vmatmul.msk.bf16.gmra.mxu1 %vm183_vm0, %v1276_v26  ;;  %v414_v3 = vmax.f32 %v247_v63, 0.0  ;;  %v434_v6 = vmax.f32 %v272_v0, 0.0 }
  0xa4   :  { %v248_v1 = vpop.f32.mrf.mxu0  ;;  %v273_v2 = vpop.f32.mrf.mxu1 }
  0xa5   :  { %v249_v4 = vadd.f32 %v248_v1, %v1525_v43  ;;  %v274_v5 = vadd.f32 %v273_v2, %v1525_v43 }
  0xa7   :  { %v416_v7 = vmax.f32 %v249_v4, 0.0  ;;  %v436_v8 = vmax.f32 %v274_v5, 0.0 }
  0xa9   :  { %v476_v9 = vpack.c.bf16 %v416_v7, %v414_v3  ;;  %v1562_v10 = vpack.c.bf16 %v436_v8, %v434_v6 }
  0xab   :  { %650 = vmatmul.bf16.gmra.mxu2 %v476_v9 }
  0xac   :  { %v251_v12 = vpop.f32.mrf.mxu0  ;;  %v276_v13 = vpop.f32.mrf.mxu1 }
  0xad   :  { %v252_v17 = vadd.f32 %v251_v12, %v1525_v43  ;;  %v277_v19 = vadd.f32 %v276_v13, %v1525_v43 }
  0xaf   :  { %1165 = vmatmul.msk.bf16.gmra.mxu1 %vm183_vm0, %v1413_v15  ;;  %v418_v15 = vmax.f32 %v252_v17, 0.0  ;;  %v438_v26 = vmax.f32 %v277_v19, 0.0 }
  0xb4   :  { %v253_v20 = vpop.f32.mrf.mxu0  ;;  %v278_v21 = vpop.f32.mrf.mxu1 }
  0xb5   :  { %v254_v22 = vadd.f32 %v253_v20, %v1525_v43  ;;  %v279_v24 = vadd.f32 %v278_v21, %v1525_v43 }
  0xb7   :  { %v420_v29 = vmax.f32 %v254_v22, 0.0  ;;  %v440_v30 = vmax.f32 %v279_v24, 0.0 }
  0xb9   :  { %v478_v32 = vpack.c.bf16 %v420_v29, %v418_v15  ;;  %v1583_v33 = vpack.c.bf16 %v440_v30, %v438_v26  ;;  %v291_v15 = vpop.f32.mrf.mxu2 }
  0xbb   :  { %655 = vmatmul.bf16.gmra.mxu2 %v478_v32 }
  0xbc   :  { %v256_v35 = vpop.f32.mrf.mxu0  ;;  %v281_v36 = vpop.f32.mrf.mxu1 }
  0xbd   :  { %v257_v39 = vadd.f32 %v256_v35, %v1525_v43  ;;  %v282_v41 = vadd.f32 %v281_v36, %v1525_v43 }
  0xbf   :  { %1166 = vmatmul.msk.bf16.gmra.mxu1 %vm183_vm0, %v1424_v18  ;;  %v422_v46 = vmax.f32 %v257_v39, 0.0  ;;  %v442_v49 = vmax.f32 %v282_v41, 0.0 }
  0xc1   :  { %v293_v32 = vpop.f32.mrf.mxu2 }
  0xc4   :  { %v258_v42 = vpop.f32.mrf.mxu0  ;;  %v283_v45 = vpop.f32.mrf.mxu1 }
  0xc5   :  { %v259_v47 = vadd.f32 %v258_v42, %v1525_v43  ;;  %v284_v48 = vadd.f32 %v283_v45, %v1525_v43 }
  0xc7   :  { %v424_v50 = vmax.f32 %v259_v47, 0.0  ;;  %v444_v51 = vmax.f32 %v284_v48, 0.0 }
  0xc9   :  { %v480_v18 = vpack.c.bf16 %v424_v50, %v422_v46  ;;  %v490_v52 = vpack.c.bf16 %v444_v51, %v442_v49  ;;  %v296_v37 = vpop.f32.mrf.mxu2 }
  0xcb   :  { %660 = vmatmul.bf16.gmra.mxu2 %v480_v18 }
  0xcc   :  { %v261_v53 = vpop.f32.mrf.mxu0  ;;  %v286_v54 = vpop.f32.mrf.mxu1 }
  0xcd   :  { %v262_v55 = vadd.f32 %v261_v53, %v1525_v43  ;;  %v287_v56 = vadd.f32 %v286_v54, %v1525_v43  ;;  %v294_v53 = vadd.f32 %v293_v32, %v1525_v43  ;;  %v1316_v54 = vld [vmem:[%s1933_s5 + $0x30] sm:$0xff] }
  0xcf   :  { %1167 = vmatmul.msk.bf16.gmra.mxu1 %vm183_vm0, %v1441_v23  ;;  %v426_v60 = vmax.f32 %v262_v55, 0.0  ;;  %v446_v0 = vmax.f32 %v287_v56, 0.0  ;;  %v1604_v23 = vperm.slane %v1522_v40, 1  ;;  %v452_v56 = vmax.f32 %v294_v53, 0.0 }
  0xd1   :  { %v298_v42 = vpop.f32.mrf.mxu2 }
  0xd4   :  { %v263_v58 = vpop.f32.mrf.mxu0  ;;  %v288_v59 = vpop.f32.mrf.mxu1 }
  0xd5   :  { %v264_v62 = vadd.f32 %v263_v58, %v1525_v43  ;;  %v289_v63 = vadd.f32 %v288_v59, %v1525_v43 }
  0xd7   :  { %v428_v1 = vmax.f32 %v264_v62, 0.0  ;;  %v448_v2 = vmax.f32 %v289_v63, 0.0 }
  0xd9   :  { %v482_v3 = vpack.c.bf16 %v428_v1, %v426_v60  ;;  %v492_v4 = vpack.c.bf16 %v448_v2, %v446_v0  ;;  %v1315_v2 = vld [vmem:[%s1933_s5 + $0x28] sm:$0xff] }
  0xdb   :  { %665 = vmatmul.bf16.gmra.mxu2 %v482_v3 }
  0xdc   :  { %v330_v5 = vpop.f32.mrf.mxu1 }
  0xdd   :  { %v331_v6 = vadd.f32 %v330_v5, %v1604_v23 }
  0xdf   :  { %1168 = vmatmul.msk.bf16.gmra.mxu1 %vm183_vm0, %v1452_v25  ;;  %v411_v9 = vmax.f32 %v331_v6, 0.0  ;;  %v297_v6 = vadd.f32 %v296_v37, %v1525_v43  ;;  %v1310_v37 = vld [vmem:[%s1933_s5] sm:$0xff] }
  0xe4   :  { %v332_v7 = vpop.f32.mrf.mxu1 }
  0xe5   :  { %v333_v8 = vadd.f32 %v332_v7, %v1604_v23  ;;  %v299_v7 = vadd.f32 %v298_v42, %v1525_v43 }
  0xe7   :  { %v413_v11 = vmax.f32 %v333_v8, 0.0  ;;  %v1314_v8 = vld [vmem:[%s1933_s5 + $0x20] sm:$0xff] }
  0xe9   :  { %v475_v12 = vpack.c.bf16 %v413_v11, %v411_v9  ;;  %v454_v11 = vmax.f32 %v297_v6, 0.0 }
  0xeb   :  { %670 = vmatmul.bf16.gmra.mxu2 %v1542_v57  ;;  %734 = vmatmul.bf16.vlgmr.msrb.gmra.mxu3 %v475_v12  ;;  %v456_v12 = vmax.f32 %v299_v7, 0.0 }
  0xec   :  { %v335_v13 = vpop.f32.mrf.mxu1 }
  0xed   :  { %v336_v40 = vadd.f32 %v335_v13, %v1604_v23 }
  0xef   :  { %1169 = vmatmul.msk.bf16.gmra.mxu1 %vm183_vm0, %v1463_v27  ;;  %v415_v17 = vmax.f32 %v336_v40, 0.0 }
  0xf4   :  { %v337_v16 = vpop.f32.mrf.mxu1 }
  0xf5   :  { %v338_v25 = vadd.f32 %v337_v16, %v1604_v23 }
  0xf7   :  { %v417_v19 = vmax.f32 %v338_v25, 0.0 }
  0xf9   :  { %v477_v20 = vpack.c.bf16 %v417_v19, %v415_v17  ;;  %v496_v19 = vpack.c.bf16 %v456_v12, %v454_v11 }
  0xfb   :  { %675 = vmatmul.bf16.gmra.mxu2 %v1562_v10  ;;  %739 = vmatmul.bf16.gmra.mxu3 %v477_v20 }
  0xfc   :  { %v340_v21 = vpop.f32.mrf.mxu1 }
  0xfd   :  { %v341_v57 = vadd.f32 %v340_v21, %v1604_v23 }
  0xff   :  { %1170 = vmatmul.msk.bf16.gmra.mxu1 %vm183_vm0, %v1471_v28  ;;  %v419_v24 = vmax.f32 %v341_v57, 0.0  ;;  %v1313_v57 = vld [vmem:[%s1933_s5 + $0x18] sm:$0xff] }
 0x104   :  { %v342_v22 = vpop.f32.mrf.mxu1 }
 0x105   :  { %v343_v27 = vadd.f32 %v342_v22, %v1604_v23  ;;  %v1312_v22 = vld [vmem:[%s1933_s5 + $0x10] sm:$0xff] }
 0x107   :  { %v421_v26 = vmax.f32 %v343_v27, 0.0 }
 0x109   :  { %v479_v29 = vpack.c.bf16 %v421_v26, %v419_v24 }
 0x10b   :  { %680 = vmatmul.bf16.gmra.mxu2 %v1583_v33  ;;  %744 = vmatmul.bf16.gmra.mxu3 %v479_v29  ;;  %v1317_v33 = vld [vmem:[%s1933_s5 + $0x38] sm:$0xff] }
 0x10c   :  { %v345_v30 = vpop.f32.mrf.mxu1  ;;  %930 = vmatpush.bf16.msrb.mxu0 %v1317_v33  ;;  %1327 = vmatpush.bf16.msra.mxu2 %v1317_v33 }
 0x10d   :  { %v346_v10 = vadd.f32 %v345_v30, %v1604_v23 }
 0x10f   :  { %1171 = vmatmul.msk.bf16.gmra.mxu1 %vm183_vm0, %v1485_v31  ;;  %v423_v35 = vmax.f32 %v346_v10, 0.0  ;;  %v1630_v31 = vpop.f32.mrf.mxu3 }
 0x110   :  { %931 = vmatpush.bf16.msrb.mxu0 %v1316_v54  ;;  %1328 = vmatpush.bf16.msra.mxu2 %v1316_v54  ;;  %v302_v27 = vadd.f32 %v1630_v31, %v1525_v43 }
 0x112   :  { %v458_v10 = vmax.f32 %v302_v27, 0.0 }
 0x114   :  { %v347_v28 = vpop.f32.mrf.mxu1  ;;  %932 = vmatpush.bf16.msrb.mxu0 %v1315_v2  ;;  %1329 = vmatpush.bf16.msra.mxu2 %v1315_v2 }
 0x115   :  { %v348_v34 = vadd.f32 %v347_v28, %v1604_v23 }
 0x117   :  { %v425_v36 = vmax.f32 %v348_v34, 0.0  ;;  %v303_v51 = vpop.f32.mrf.mxu3 }
 0x118   :  { %933 = vmatpush.bf16.msrb.mxu0 %v1314_v8  ;;  %1330 = vmatpush.bf16.msra.mxu2 %v1314_v8  ;;  %v304_v24 = vadd.f32 %v303_v51, %v1525_v43 }
 0x119   :  { %v481_v39 = vpack.c.bf16 %v425_v36, %v423_v35 }
 0x11a   :  { %v460_v28 = vmax.f32 %v304_v24, 0.0 }
 0x11b   :  { %685 = vmatmul.bf16.gmra.mxu2 %v490_v52  ;;  %749 = vmatmul.bf16.gmra.mxu3 %v481_v39  ;;  %v292_v52 = vadd.f32 %v291_v15, %v1525_v43 }
 0x11c   :  { %v350_v41 = vpop.f32.mrf.mxu1  ;;  %934 = vmatpush.bf16.msrb.mxu0 %v1313_v57  ;;  %1331 = vmatpush.bf16.msra.mxu2 %v1313_v57  ;;  %v498_v39 = vpack.c.bf16 %v460_v28, %v458_v10 }
 0x11d   :  { %v351_v45 = vadd.f32 %v350_v41, %v1604_v23  ;;  %v450_v55 = vmax.f32 %v292_v52, 0.0 }
 0x11f   :  { %1172 = vmatmul.msk.bf16.gmra.mxu1 %vm183_vm0, %v1512_v38  ;;  %v427_v48 = vmax.f32 %v351_v45, 0.0  ;;  %v1634_v38 = vpop.f32.mrf.mxu2  ;;  %v1644_v60 = vpop.f32.mrf.mxu3 }
 0x120   :  { %935 = vmatpush.bf16.msrb.mxu0 %v1312_v22  ;;  %1332 = vmatpush.bf16.msra.mxu2 %v1312_v22  ;;  %v307_v45 = vadd.f32 %v1644_v60, %v1525_v43  ;;  %v1698_v60 = vld [vmem:[%s1932_s4] ss:$0 sm:$0xff] }
 0x124   :  { %v352_v46 = vpop.f32.mrf.mxu1 }
 0x125   :  { %v353_v47 = vadd.f32 %v352_v46, %v1604_v23 }
 0x127   :  { %v429_v49 = vmax.f32 %v353_v47, 0.0  ;;  %v1647_v63 = vpop.f32.mrf.mxu2  ;;  %v308_v5 = vpop.f32.mrf.mxu3 }
 0x128   :  { %v309_v46 = vadd.f32 %v308_v5, %v1525_v43 }
 0x129   :  { %v483_v50 = vpack.c.bf16 %v429_v49, %v427_v48  ;;  %v462_v49 = vmax.f32 %v307_v45, 0.0 }
 0x12b   :  { %690 = vmatmul.bf16.gmra.mxu2 %v492_v4  ;;  %754 = vmatmul.bf16.gmra.mxu3 %v483_v50  ;;  %v464_v50 = vmax.f32 %v309_v46, 0.0 }
 0x12c   :  { %v355_v18 = vpop.f32.mrf.mxu1 }
 0x12d   :  { %v356_v58 = vadd.f32 %v355_v18, %v1604_v23 }
 0x12f   :  { %1173 = vmatmul.msk.bf16.gmra.mxu1 %vm183_vm0, %v1531_v44  ;;  %v431_v0 = vmax.f32 %v356_v58, 0.0  ;;  %v494_v44 = vpack.c.bf16 %v452_v56, %v450_v55  ;;  %v1659_v9 = vpop.f32.mrf.mxu2  ;;  %v311_v20 = vpop.f32.mrf.mxu3  ;;  %v500_v56 = vpack.c.bf16 %v464_v50, %v462_v49 }
 0x130   :  { %v652_v22 = vadd.f32 %v1698_v60, %v1659_v9 }
 0x134   :  { %v357_v59 = vpop.f32.mrf.mxu1 }
 0x135   :  { %v358_v62 = vadd.f32 %v357_v59, %v1604_v23 }
 0x137   :  { %v433_v1 = vmax.f32 %v358_v62, 0.0  ;;  %v1663_v21 = vpop.f32.mrf.mxu2  ;;  %v313_v26 = vpop.f32.mrf.mxu3  ;;  %v312_v62 = vadd.f32 %v311_v20, %v1525_v43 }
 0x138   :  { %v654_v24 = vadd.f32 %v1698_v60, %v1663_v21 }
 0x139   :  { %v485_v3 = vpack.c.bf16 %v433_v1, %v431_v0  ;;  %v314_v0 = vadd.f32 %v313_v26, %v1525_v43  ;;  %v466_v5 = vmax.f32 %v312_v62, 0.0 }
 0x13b   :  { %695 = vmatmul.bf16.gmra.mxu2 %v494_v44  ;;  %759 = vmatmul.bf16.gmra.mxu3 %v485_v3  ;;  %v647_v44 = vadd.f32 %v1698_v60, %v1634_v38  ;;  %v649_v3 = vadd.f32 %v1698_v60, %v1647_v63  ;;  %v468_v6 = vmax.f32 %v314_v0, 0.0 }
 0x13c   :  { %v360_v4 = vpop.f32.mrf.mxu1 }
 0x13d   :  { %v361_v13 = vadd.f32 %v360_v4, %v1604_v23 }
 0x13f   :  { %1174 = vmatmul.msk.bf16.gmra.mxu1 %vm183_vm0, %v1551_v61  ;;  %v435_v25 = vmax.f32 %v361_v13, 0.0  ;;  %v1677_v30 = vpop.f32.mrf.mxu2  ;;  %v316_v33 = vpop.f32.mrf.mxu3 }
 0x140   :  { %v317_v57 = vadd.f32 %v316_v33, %v1525_v43  ;;  %v657_v46 = vadd.f32 %v1698_v60, %v1677_v30 }
 0x144   :  { %v362_v40 = vpop.f32.mrf.mxu1 }
 0x145   :  { %v363_v16 = vadd.f32 %v362_v40, %v1604_v23 }
 0x147   :  { %v437_v17 = vmax.f32 %v363_v16, 0.0  ;;  %v1686_v42 = vpop.f32.mrf.mxu2  ;;  %v318_v18 = vpop.f32.mrf.mxu3 }
 0x148   :  { %v659_v49 = vadd.f32 %v1698_v60, %v1686_v42 }
 0x149   :  { %v487_v61 = vpack.c.bf16 %v437_v17, %v435_v25 }
 0x14b   :  { %700 = vmatmul.bf16.gmra.mxu2 %v496_v19  ;;  %764 = vmatmul.bf16.gmra.mxu3 %v487_v61  ;;  %v502_v19 = vpack.c.bf16 %v468_v6, %v466_v5 }
 0x14c   :  { %v365_v15 = vpop.f32.mrf.mxu1 }
 0x14d   :  { %v366_v29 = vadd.f32 %v365_v15, %v1604_v23  ;;  %v319_v15 = vadd.f32 %v318_v18, %v1525_v43 }
 0x14f   :  { %1175 = vmatmul.msk.bf16.gmra.mxu1 %vm183_vm0, %v1572_v14  ;;  %v1311_v14 = vld [vmem:[%s1933_s5 + $0x8] sm:$0xff]  ;;  %v439_v35 = vmax.f32 %v366_v29, 0.0  ;;  %v1693_v54 = vpop.f32.mrf.mxu2  ;;  %v470_v29 = vmax.f32 %v317_v57, 0.0 }
 0x150   :  { %936 = vmatpush.bf16.msrb.mxu0 %v1311_v14  ;;  %1333 = vmatpush.bf16.msra.mxu2 %v1311_v14 }
 0x154   :  { %v367_v32 = vpop.f32.mrf.mxu1  ;;  %937 = vmatpush.bf16.msrb.mxu0 %v1310_v37  ;;  %1334 = vmatpush.bf16.msra.mxu2 %v1310_v37 }
 0x155   :  { %v368_v34 = vadd.f32 %v367_v32, %v1604_v23  ;;  %v472_v32 = vmax.f32 %v319_v15, 0.0 }
 0x157   :  { %v441_v36 = vmax.f32 %v368_v34, 0.0  ;;  %v1702_v1 = vpop.f32.mrf.mxu2  ;;  %v504_v9 = vpack.c.bf16 %v472_v32, %v470_v29 }
 0x158   :  { %v664_v5 = vadd.f32 %v1698_v60, %v1702_v1 }
 0x159   :  { %v489_v41 = vpack.c.bf16 %v441_v36, %v439_v35 }
 0x15b   :  { %705 = vmatmul.bf16.gmra.mxu2 %v498_v39  ;;  %769 = vmatmul.bf16.gmra.mxu3 %v489_v41 }
 0x15c   :  { %v370_v31 = vpop.f32.mrf.mxu1 }
 0x15d   :  { %v371_v47 = vadd.f32 %v370_v31, %v1604_v23 }
 0x15f   :  { %v443_v52 = vmax.f32 %v371_v47, 0.0  ;;  %v1710_v20 = vpop.f32.mrf.mxu2 }
 0x164   :  { %v372_v48 = vpop.f32.mrf.mxu1 }
 0x165   :  { %v373_v51 = vadd.f32 %v372_v48, %v1604_v23 }
 0x167   :  { %v445_v53 = vmax.f32 %v373_v51, 0.0  ;;  %v668_v28 = vpop.f32.mrf.mxu2 }
 0x168   :  { %v669_v57 = vadd.f32 %v1698_v60, %v668_v28 }
 0x169   :  { %v491_v55 = vpack.c.bf16 %v445_v53, %v443_v52 }
 0x16b   :  { %710 = vmatmul.bf16.gmra.mxu2 %v500_v56  ;;  %774 = vmatmul.bf16.gmra.mxu3 %v491_v55 }
 0x16c   :  { %v375_v58 = vpop.f32.mrf.mxu1 }
 0x16d   :  { %v376_v2 = vadd.f32 %v375_v58, %v1604_v23 }
 0x16e   :  { %v735_v59 = vpop.f32.mrf.mxu3 }
 0x16f   :  { %v736_v7 = vadd.f32 %v735_v59, %v647_v44  ;;  %v447_v12 = vmax.f32 %v376_v2, 0.0  ;;  %v671_v45 = vpop.f32.mrf.mxu2  ;;  %v662_v2 = vadd.f32 %v1698_v60, %v1693_v54 }
 0x171   :  { %v815_v16 = vmax.f32 %v736_v7, 0.0 }
 0x174   :  { %v377_v4 = vpop.f32.mrf.mxu1 }
 0x175   :  { %v378_v8 = vadd.f32 %v377_v4, %v1604_v23 }
 0x176   :  { %v737_v11 = vpop.f32.mrf.mxu3 }
 0x177   :  { %v449_v13 = vmax.f32 %v378_v8, 0.0  ;;  %v738_v40 = vadd.f32 %v737_v11, %v649_v3  ;;  %v673_v62 = vpop.f32.mrf.mxu2 }
 0x179   :  { %v493_v25 = vpack.c.bf16 %v449_v13, %v447_v12  ;;  %v816_v17 = vmax.f32 %v738_v40, 0.0 }
 0x17b   :  { %715 = vmatmul.bf16.gmra.mxu2 %v502_v19  ;;  %779 = vmatmul.bf16.gmra.mxu3 %v493_v25  ;;  %v847_v38 = vpack.c.bf16 %v816_v17, %v815_v16 }
 0x17c   :  { %v380_v63 = vpop.f32.mrf.mxu1 }
 0x17d   :  { %938 = vmatmul.bf16.vlgmr.msrb.gmra.mxu0 %v847_v38  ;;  %v381_v27 = vadd.f32 %v380_v63, %v1604_v23  ;;  %v667_v63 = vadd.f32 %v1698_v60, %v1710_v20 }
 0x17e   :  { %v740_v61 = vpop.f32.mrf.mxu3 }
 0x17f   :  { %v741_v14 = vadd.f32 %v740_v61, %v652_v22  ;;  %v451_v35 = vmax.f32 %v381_v27, 0.0  ;;  %v676_v3 = vpop.f32.mrf.mxu2 }
 0x181   :  { %v817_v43 = vmax.f32 %v741_v14, 0.0 }
 0x184   :  { %v382_v26 = vpop.f32.mrf.mxu1 }
 0x185   :  { %v383_v10 = vadd.f32 %v382_v26, %v1604_v23 }
 0x186   :  { %v742_v34 = vpop.f32.mrf.mxu3 }
 0x187   :  { %v453_v36 = vmax.f32 %v383_v10, 0.0  ;;  %v743_v37 = vadd.f32 %v742_v34, %v654_v24  ;;  %v678_v19 = vpop.f32.mrf.mxu2 }
 0x189   :  { %v495_v39 = vpack.c.bf16 %v453_v36, %v451_v35  ;;  %v818_v41 = vmax.f32 %v743_v37, 0.0 }
 0x18b   :  { %720 = vmatmul.bf16.gmra.mxu2 %v504_v9  ;;  %784 = vmatmul.bf16.gmra.mxu3 %v495_v39  ;;  %v848_v33 = vpack.c.bf16 %v818_v41, %v817_v43  ;;  %v672_v43 = vadd.f32 %v1698_v60, %v671_v45  ;;  %v674_v41 = vadd.f32 %v1698_v60, %v673_v62 }
 0x18c   :  { %v385_v31 = vpop.f32.mrf.mxu1 }
 0x18d   :  { %943 = vmatmul.bf16.gmra.mxu0 %v848_v33  ;;  %v386_v47 = vadd.f32 %v385_v31, %v1604_v23 }
 0x18e   :  { %v745_v21 = vpop.f32.mrf.mxu3 }
 0x18f   :  { %v746_v50 = vadd.f32 %v745_v21, %v657_v46  ;;  %v455_v52 = vmax.f32 %v386_v47, 0.0  ;;  %v681_v32 = vpop.f32.mrf.mxu2 }
 0x191   :  { %v819_v56 = vmax.f32 %v746_v50, 0.0 }
 0x194   :  { %v387_v48 = vpop.f32.mrf.mxu1 }
 0x195   :  { %v388_v51 = vadd.f32 %v387_v48, %v1604_v23 }
 0x196   :  { %v747_v18 = vpop.f32.mrf.mxu3 }
 0x197   :  { %v457_v53 = vmax.f32 %v388_v51, 0.0  ;;  %v748_v55 = vadd.f32 %v747_v18, %v659_v49  ;;  %v683_v37 = vpop.f32.mrf.mxu2 }
 0x199   :  { %v497_v58 = vpack.c.bf16 %v457_v53, %v455_v52  ;;  %v820_v59 = vmax.f32 %v748_v55, 0.0  ;;  %v677_v53 = vadd.f32 %v1698_v60, %v676_v3 }
 0x19b   :  { %789 = vmatmul.bf16.gmra.mxu3 %v497_v58  ;;  %v849_v0 = vpack.c.bf16 %v820_v59, %v819_v56  ;;  %v679_v58 = vadd.f32 %v1698_v60, %v678_v19 }
 0x19c   :  { %v390_v30 = vpop.f32.mrf.mxu1 }
 0x19d   :  { %948 = vmatmul.bf16.gmra.mxu0 %v849_v0  ;;  %v391_v42 = vadd.f32 %v390_v30, %v1604_v23 }
 0x19e   :  { %v750_v44 = vpop.f32.mrf.mxu3 }
 0x19f   :  { %v751_v6 = vadd.f32 %v750_v44, %v662_v2  ;;  %v459_v11 = vmax.f32 %v391_v42, 0.0  ;;  %v686_v18 = vpop.f32.mrf.mxu2 }
 0x1a1   :  { %v821_v40 = vmax.f32 %v751_v6, 0.0 }
 0x1a4   :  { %v392_v4 = vpop.f32.mrf.mxu1 }
 0x1a5   :  { %v393_v7 = vadd.f32 %v392_v4, %v1604_v23 }
 0x1a6   :  { %v752_v8 = vpop.f32.mrf.mxu3 }
 0x1a7   :  { %v461_v12 = vmax.f32 %v393_v7, 0.0  ;;  %v753_v13 = vadd.f32 %v752_v8, %v664_v5  ;;  %v688_v0 = vpop.f32.mrf.mxu2 }
 0x1a9   :  { %v499_v16 = vpack.c.bf16 %v461_v12, %v459_v11  ;;  %v822_v25 = vmax.f32 %v753_v13, 0.0  ;;  %v682_v11 = vadd.f32 %v1698_v60, %v681_v32  ;;  %v684_v12 = vadd.f32 %v1698_v60, %v683_v37 }
 0x1ab   :  { %794 = vmatmul.bf16.gmra.mxu3 %v499_v16  ;;  %v850_v17 = vpack.c.bf16 %v822_v25, %v821_v40 }
 0x1ac   :  { %v395_v54 = vpop.f32.mrf.mxu1 }
 0x1ad   :  { %953 = vmatmul.bf16.gmra.mxu0 %v850_v17  ;;  %v396_v1 = vadd.f32 %v395_v54, %v1604_v23 }
 0x1ae   :  { %v755_v38 = vpop.f32.mrf.mxu3 }
 0x1af   :  { %v756_v15 = vadd.f32 %v755_v38, %v667_v63  ;;  %v463_v24 = vmax.f32 %v396_v1, 0.0  ;;  %v691_v8 = vpop.f32.mrf.mxu2  ;;  %v687_v38 = vadd.f32 %v1698_v60, %v686_v18  ;;  %v689_v1 = vadd.f32 %v1698_v60, %v688_v0 }
 0x1b1   :  { %v823_v14 = vmax.f32 %v756_v15, 0.0 }
 0x1b4   :  { %v397_v61 = vpop.f32.mrf.mxu1 }
 0x1b5   :  { %v398_v22 = vadd.f32 %v397_v61, %v1604_v23 }
 0x1b6   :  { %v757_v27 = vpop.f32.mrf.mxu3 }
 0x1b7   :  { %v465_v26 = vmax.f32 %v398_v22, 0.0  ;;  %v758_v29 = vadd.f32 %v757_v27, %v669_v57  ;;  %v693_v17 = vpop.f32.mrf.mxu2  ;;  %v1752_v22 = vld [vmem:[%s1934_s6] ss:$0 sm:$0xff] }
 0x1b9   :  { %v501_v10 = vpack.c.bf16 %v465_v26, %v463_v24  ;;  %v824_v34 = vmax.f32 %v758_v29, 0.0 }
 0x1bb   :  { %799 = vmatmul.bf16.gmra.mxu3 %v501_v10  ;;  %v851_v35 = vpack.c.bf16 %v824_v34, %v823_v14 }
 0x1bc   :  { %v400_v36 = vpop.f32.mrf.mxu1 }
 0x1bd   :  { %958 = vmatmul.bf16.gmra.mxu0 %v851_v35  ;;  %v401_v28 = vadd.f32 %v400_v36, %v1604_v23  ;;  %v692_v35 = vadd.f32 %v1698_v60, %v691_v8 }
 0x1be   :  { %v760_v20 = vpop.f32.mrf.mxu3 }
 0x1bf   :  { %v761_v9 = vadd.f32 %v760_v20, %v672_v43  ;;  %v467_v21 = vmax.f32 %v401_v28, 0.0  ;;  %v696_v63 = vpop.f32.mrf.mxu2  ;;  %v694_v20 = vadd.f32 %v1698_v60, %v693_v17 }
 0x1c1   :  { %v825_v48 = vmax.f32 %v761_v9, 0.0 }
 0x1c4   :  { %v402_v39 = vpop.f32.mrf.mxu1 }
 0x1c5   :  { %v403_v33 = vadd.f32 %v402_v39, %v1604_v23 }
 0x1c6   :  { %v762_v31 = vpop.f32.mrf.mxu3 }
 0x1c7   :  { %v469_v46 = vmax.f32 %v403_v33, 0.0  ;;  %v763_v47 = vadd.f32 %v762_v31, %v674_v41  ;;  %v698_v14 = vpop.f32.mrf.mxu2 }
 0x1c9   :  { %v503_v49 = vpack.c.bf16 %v469_v46, %v467_v21  ;;  %v826_v50 = vmax.f32 %v763_v47, 0.0 }
 0x1cb   :  { %804 = vmatmul.bf16.gmra.mxu3 %v503_v49  ;;  %v852_v51 = vpack.c.bf16 %v826_v50, %v825_v48  ;;  %v697_v49 = vadd.f32 %v1698_v60, %v696_v63 }
 0x1cc   :  { %v405_v52 = vpop.f32.mrf.mxu1 }
 0x1cd   :  { %963 = vmatmul.bf16.gmra.mxu0 %v852_v51  ;;  %v406_v55 = vadd.f32 %v405_v52, %v1604_v23  ;;  %v699_v51 = vadd.f32 %v1698_v60, %v698_v14 }
 0x1ce   :  { %v765_v45 = vpop.f32.mrf.mxu3 }
 0x1cf   :  { %v766_v59 = vadd.f32 %v765_v45, %v677_v53  ;;  %v471_v44 = vmax.f32 %v406_v55, 0.0  ;;  %v701_v39 = vpop.f32.mrf.mxu2 }
 0x1d1   :  { %v827_v4 = vmax.f32 %v766_v59, 0.0 }
 0x1d4   :  { %v407_v56 = vpop.f32.mrf.mxu1 }
 0x1d5   :  { %v408_v62 = vadd.f32 %v407_v56, %v1604_v23 }
 0x1d6   :  { %v767_v30 = vpop.f32.mrf.mxu3 }
 0x1d7   :  { %v473_v2 = vmax.f32 %v408_v62, 0.0  ;;  %v768_v42 = vadd.f32 %v767_v30, %v679_v58  ;;  %v703_v47 = vpop.f32.mrf.mxu2 }
 0x1d9   :  { %v505_v5 = vpack.c.bf16 %v473_v2, %v471_v44  ;;  %v828_v6 = vmax.f32 %v768_v42, 0.0  ;;  %v702_v44 = vadd.f32 %v1698_v60, %v701_v39  ;;  %v704_v42 = vadd.f32 %v1698_v60, %v703_v47 }
 0x1db   :  { %809 = vmatmul.bf16.gmra.mxu3 %v505_v5  ;;  %v853_v7 = vpack.c.bf16 %v828_v6, %v827_v4 }
 0x1dd   :  { %968 = vmatmul.bf16.gmra.mxu0 %v853_v7 }
 0x1de   :  { %v770_v3 = vpop.f32.mrf.mxu3 }
 0x1df   :  { %v771_v13 = vadd.f32 %v770_v3, %v682_v11  ;;  %v706_v62 = vpop.f32.mrf.mxu2 }
 0x1e1   :  { %v829_v16 = vmax.f32 %v771_v13, 0.0 }
 0x1e6   :  { %v772_v40 = vpop.f32.mrf.mxu3 }
 0x1e7   :  { %v773_v23 = vadd.f32 %v772_v40, %v684_v12  ;;  %v708_v5 = vpop.f32.mrf.mxu2 }
 0x1e9   :  { %v830_v25 = vmax.f32 %v773_v23, 0.0 }
 0x1eb   :  { %v854_v54 = vpack.c.bf16 %v830_v25, %v829_v16  ;;  %v707_v25 = vadd.f32 %v1698_v60, %v706_v62 }
 0x1ed   :  { %973 = vmatmul.bf16.gmra.mxu0 %v854_v54  ;;  %v709_v54 = vadd.f32 %v1698_v60, %v708_v5 }
 0x1ee   :  { %v775_v19 = vpop.f32.mrf.mxu3 }
 0x1ef   :  { %v776_v61 = vadd.f32 %v775_v19, %v687_v38  ;;  %v711_v23 = vpop.f32.mrf.mxu2 }
 0x1f1   :  { %v831_v27 = vmax.f32 %v776_v61, 0.0 }
 0x1f6   :  { %v777_v57 = vpop.f32.mrf.mxu3 }
 0x1f7   :  { %v778_v15 = vadd.f32 %v777_v57, %v689_v1  ;;  %v713_v57 = vpop.f32.mrf.mxu2 }
 0x1f9   :  { %v832_v24 = vmax.f32 %v778_v15, 0.0 }
 0x1fa   :  { %v939_v26 = vpop.f32.mrf.mxu0 }
 0x1fb   :  { %v855_v29 = vpack.c.bf16 %v832_v24, %v831_v27  ;;  %v940_v32 = vadd.f32 %v1752_v22, %v939_v26 }
 0x1fd   :  { %1020 = vst.msk [vmem:[%s1935_s7] sm:$0xff] %vm1019_vm1, %v940_v32  ;;  %978 = vmatmul.bf16.gmra.mxu0 %v855_v29  ;;  %v712_v32 = vadd.f32 %v1698_v60, %v711_v23 }
 0x1fe   :  { %v780_v10 = vpop.f32.mrf.mxu3 }
 0x1ff   :  { %v781_v37 = vadd.f32 %v780_v10, %v692_v35  ;;  %v716_v10 = vpop.f32.mrf.mxu2 }
 0x201   :  { %v833_v41 = vmax.f32 %v781_v37, 0.0 }
 0x202   :  { %v941_v34 = vpop.f32.mrf.mxu0 }
 0x203   :  { %v942_v36 = vadd.f32 %v1752_v22, %v941_v34  ;;  %v714_v34 = vadd.f32 %v1698_v60, %v713_v57 }
 0x205   :  { %1021 = vst.msk [vmem:[%s1935_s7 + $0x8] sm:$0xff] %vm1019_vm1, %v942_v36 }
 0x206   :  { %v782_v43 = vpop.f32.mrf.mxu3 }
 0x207   :  { %v783_v28 = vadd.f32 %v782_v43, %v694_v20 }
 0x209   :  { %v834_v9 = vmax.f32 %v783_v28, 0.0 }
 0x20a   :  { %v944_v33 = vpop.f32.mrf.mxu0 }
 0x20b   :  { %v856_v31 = vpack.c.bf16 %v834_v9, %v833_v41  ;;  %v945_v21 = vadd.f32 %v1752_v22, %v944_v33  ;;  %v718_v9 = vpop.f32.mrf.mxu2 }
 0x20c   :  { %v719_v47 = vadd.f32 %v1698_v60, %v718_v9 }
 0x20d   :  { %1022 = vst.msk [vmem:[%s1935_s7 + $0x10] sm:$0xff] %vm1019_vm1, %v945_v21  ;;  %983 = vmatmul.bf16.gmra.mxu0 %v856_v31  ;;  %v717_v21 = vadd.f32 %v1698_v60, %v716_v10 }
 0x20e   :  { %v785_v46 = vpop.f32.mrf.mxu3 }
 0x20f   :  { %v786_v18 = vadd.f32 %v785_v46, %v697_v49 }
 0x211   :  { %v835_v53 = vmax.f32 %v786_v18, 0.0 }
 0x212   :  { %v946_v48 = vpop.f32.mrf.mxu0 }
 0x213   :  { %v947_v50 = vadd.f32 %v1752_v22, %v946_v48 }
 0x215   :  { %1023 = vst.msk [vmem:[%s1935_s7 + $0x18] sm:$0xff] %vm1019_vm1, %v947_v50 }
 0x216   :  { %v787_v52 = vpop.f32.mrf.mxu3 }
 0x217   :  { %v788_v45 = vadd.f32 %v787_v52, %v699_v51  ;;  %v721_v51 = vpop.f32.mrf.mxu2 }
 0x218   :  { %v722_v62 = vadd.f32 %v1698_v60, %v721_v51 }
 0x219   :  { %v836_v55 = vmax.f32 %v788_v45, 0.0 }
 0x21a   :  { %v949_v56 = vpop.f32.mrf.mxu0 }
 0x21b   :  { %v857_v58 = vpack.c.bf16 %v836_v55, %v835_v53  ;;  %v950_v59 = vadd.f32 %v1752_v22, %v949_v56 }
 0x21d   :  { %1024 = vst.msk [vmem:[%s1935_s7 + $0x20] sm:$0xff] %vm1019_vm1, %v950_v59  ;;  %988 = vmatmul.bf16.gmra.mxu0 %v857_v58 }
 0x21e   :  { %v790_v0 = vpop.f32.mrf.mxu3 }
 0x21f   :  { %v791_v4 = vadd.f32 %v790_v0, %v702_v44  ;;  %v723_v58 = vpop.f32.mrf.mxu2 }
 0x221   :  { %v837_v3 = vmax.f32 %v791_v4, 0.0 }
 0x222   :  { %v951_v30 = vpop.f32.mrf.mxu0 }
 0x223   :  { %v952_v2 = vadd.f32 %v1752_v22, %v951_v30  ;;  %v724_v30 = vadd.f32 %v1698_v60, %v723_v58 }
 0x225   :  { %1025 = vst.msk [vmem:[%s1935_s7 + $0x28] sm:$0xff] %vm1019_vm1, %v952_v2 }
 0x226   :  { %v792_v6 = vpop.f32.mrf.mxu3 }
 0x227   :  { %v793_v7 = vadd.f32 %v792_v6, %v704_v42 }
 0x229   :  { %v838_v8 = vmax.f32 %v793_v7, 0.0 }
 0x22a   :  { %v954_v11 = vpop.f32.mrf.mxu0 }
 0x22b   :  { %v858_v12 = vpack.c.bf16 %v838_v8, %v837_v3  ;;  %v955_v13 = vadd.f32 %v1752_v22, %v954_v11 }
 0x22d   :  { %1026 = vst.msk [vmem:[%s1935_s7 + $0x30] sm:$0xff] %vm1019_vm1, %v955_v13  ;;  %993 = vmatmul.bf16.gmra.mxu0 %v858_v12 }
 0x22e   :  { %v795_v40 = vpop.f32.mrf.mxu3 }
 0x22f   :  { %v796_v19 = vadd.f32 %v795_v40, %v707_v25 }
 0x231   :  { %v839_v1 = vmax.f32 %v796_v19, 0.0 }
 0x232   :  { %v956_v16 = vpop.f32.mrf.mxu0 }
 0x233   :  { %v957_v17 = vadd.f32 %v1752_v22, %v956_v16 }
 0x235   :  { %1027 = vst.msk [vmem:[%s1935_s7 + $0x38] sm:$0xff] %vm1019_vm1, %v957_v17 }
 0x236   :  { %v797_v38 = vpop.f32.mrf.mxu3 }
 0x237   :  { %v798_v63 = vadd.f32 %v797_v38, %v709_v54 }
 0x239   :  { %v840_v61 = vmax.f32 %v798_v63, 0.0 }
 0x23a   :  { %v959_v15 = vpop.f32.mrf.mxu0 }
 0x23b   :  { %v859_v27 = vpack.c.bf16 %v840_v61, %v839_v1  ;;  %v960_v24 = vadd.f32 %v1752_v22, %v959_v15 }
 0x23d   :  { %1028 = vst.msk [vmem:[%s1935_s7 + $0x40] sm:$0xff] %vm1019_vm1, %v960_v24  ;;  %998 = vmatmul.bf16.gmra.mxu0 %v859_v27 }
 0x23e   :  { %v800_v26 = vpop.f32.mrf.mxu3 }
 0x23f   :  { %v801_v35 = vadd.f32 %v800_v26, %v712_v32 }
 0x241   :  { %v841_v37 = vmax.f32 %v801_v35, 0.0 }
 0x242   :  { %v961_v29 = vpop.f32.mrf.mxu0 }
 0x243   :  { %v962_v14 = vadd.f32 %v1752_v22, %v961_v29 }
 0x245   :  { %1029 = vst.msk [vmem:[%s1935_s7 + $0x48] sm:$0xff] %vm1019_vm1, %v962_v14 }
 0x246   :  { %v802_v36 = vpop.f32.mrf.mxu3 }
 0x247   :  { %v803_v20 = vadd.f32 %v802_v36, %v714_v34 }
 0x249   :  { %v842_v43 = vmax.f32 %v803_v20, 0.0 }
 0x24a   :  { %v964_v28 = vpop.f32.mrf.mxu0 }
 0x24b   :  { %v860_v39 = vpack.c.bf16 %v842_v43, %v841_v37  ;;  %v965_v41 = vadd.f32 %v1752_v22, %v964_v28 }
 0x24d   :  { %1030 = vst.msk [vmem:[%s1935_s7 + $0x50] sm:$0xff] %vm1019_vm1, %v965_v41  ;;  %1003 = vmatmul.bf16.gmra.mxu0 %v860_v39 }
 0x24e   :  { %v805_v33 = vpop.f32.mrf.mxu3 }
 0x24f   :  { %v806_v48 = vadd.f32 %v805_v33, %v717_v21 }
 0x251   :  { %v843_v18 = vmax.f32 %v806_v48, 0.0 }
 0x252   :  { %v966_v31 = vpop.f32.mrf.mxu0 }
 0x253   :  { %v967_v46 = vadd.f32 %v1752_v22, %v966_v31 }
 0x255   :  { %1031 = vst.msk [vmem:[%s1935_s7 + $0x58] sm:$0xff] %vm1019_vm1, %v967_v46 }
 0x256   :  { %v807_v49 = vpop.f32.mrf.mxu3 }
 0x257   :  { %v808_v50 = vadd.f32 %v807_v49, %v719_v47 }
 0x259   :  { %v844_v52 = vmax.f32 %v808_v50, 0.0 }
 0x25a   :  { %v969_v45 = vpop.f32.mrf.mxu0 }
 0x25b   :  { %v861_v53 = vpack.c.bf16 %v844_v52, %v843_v18  ;;  %v970_v55 = vadd.f32 %v1752_v22, %v969_v45 }
 0x25d   :  { %1032 = vst.msk [vmem:[%s1935_s7 + $0x60] sm:$0xff] %vm1019_vm1, %v970_v55  ;;  %1008 = vmatmul.bf16.gmra.mxu0 %v861_v53 }
 0x25e   :  { %v810_v56 = vpop.f32.mrf.mxu3 }
 0x25f   :  { %v811_v44 = vadd.f32 %v810_v56, %v722_v62 }
 0x261   :  { %v845_v4 = vmax.f32 %v811_v44, 0.0 }
 0x262   :  { %v971_v59 = vpop.f32.mrf.mxu0 }
 0x263   :  { %v972_v0 = vadd.f32 %v1752_v22, %v971_v59 }
 0x265   :  { %1033 = vst.msk [vmem:[%s1935_s7 + $0x68] sm:$0xff] %vm1019_vm1, %v972_v0 }
 0x266   :  { %v812_v2 = vpop.f32.mrf.mxu3 }
 0x267   :  { %v813_v42 = vadd.f32 %v812_v2, %v724_v30 }
 0x269   :  { %v846_v5 = vmax.f32 %v813_v42, 0.0 }
 0x26a   :  { %v974_v6 = vpop.f32.mrf.mxu0 }
 0x26b   :  { %v862_v7 = vpack.c.bf16 %v846_v5, %v845_v4  ;;  %v975_v3 = vadd.f32 %v1752_v22, %v974_v6 }
 0x26d   :  { %1034 = vst.msk [vmem:[%s1935_s7 + $0x70] sm:$0xff] %vm1019_vm1, %v975_v3  ;;  %1013 = vmatmul.bf16.vlgmr.msra.gmra.mxu2 %v862_v7 }
 0x272   :  { %v976_v60 = vpop.f32.mrf.mxu0 }
 0x273   :  { %v977_v8 = vadd.f32 %v1752_v22, %v976_v60 }
 0x275   :  { %1035 = vst.msk [vmem:[%s1935_s7 + $0x78] sm:$0xff] %vm1019_vm1, %v977_v8 }
 0x27a   :  { %v979_v11 = vpop.f32.mrf.mxu0 }
 0x27b   :  { %v980_v12 = vadd.f32 %v1752_v22, %v979_v11 }
 0x27d   :  { %1036 = vst.msk [vmem:[%s1935_s7 + $0x80] sm:$0xff] %vm1019_vm1, %v980_v12 }
 0x282   :  { %v981_v13 = vpop.f32.mrf.mxu0 }
 0x283   :  { %v982_v40 = vadd.f32 %v1752_v22, %v981_v13 }
 0x285   :  { %1037 = vst.msk [vmem:[%s1935_s7 + $0x88] sm:$0xff] %vm1019_vm1, %v982_v40 }
 0x28a   :  { %v984_v23 = vpop.f32.mrf.mxu0 }
 0x28b   :  { %v985_v16 = vadd.f32 %v1752_v22, %v984_v23 }
 0x28d   :  { %1038 = vst.msk [vmem:[%s1935_s7 + $0x90] sm:$0xff] %vm1019_vm1, %v985_v16 }
 0x292   :  { %v986_v25 = vpop.f32.mrf.mxu0 }
 0x293   :  { %v987_v17 = vadd.f32 %v1752_v22, %v986_v25 }
 0x295   :  { %1039 = vst.msk [vmem:[%s1935_s7 + $0x98] sm:$0xff] %vm1019_vm1, %v987_v17 }
 0x29a   :  { %v989_v54 = vpop.f32.mrf.mxu0 }
 0x29b   :  { %v990_v19 = vadd.f32 %v1752_v22, %v989_v54 }
 0x29d   :  { %1040 = vst.msk [vmem:[%s1935_s7 + $0xa0] sm:$0xff] %vm1019_vm1, %v990_v19 }
 0x2a2   :  { %v991_v38 = vpop.f32.mrf.mxu0 }
 0x2a3   :  { %v992_v63 = vadd.f32 %v1752_v22, %v991_v38 }
 0x2a5   :  { %1041 = vst.msk [vmem:[%s1935_s7 + $0xa8] sm:$0xff] %vm1019_vm1, %v992_v63 }
 0x2aa   :  { %v994_v1 = vpop.f32.mrf.mxu0 }
 0x2ab   :  { %v995_v61 = vadd.f32 %v1752_v22, %v994_v1 }
 0x2ad   :  { %1042 = vst.msk [vmem:[%s1935_s7 + $0xb0] sm:$0xff] %vm1019_vm1, %v995_v61 }
 0x2b2   :  { %v996_v57 = vpop.f32.mrf.mxu0 }
 0x2b3   :  { %v997_v15 = vadd.f32 %v1752_v22, %v996_v57 }
 0x2b5   :  { %1043 = vst.msk [vmem:[%s1935_s7 + $0xb8] sm:$0xff] %vm1019_vm1, %v997_v15 }
 0x2ba   :  { %v999_v27 = vpop.f32.mrf.mxu0 }
 0x2bb   :  { %v1000_v24 = vadd.f32 %v1752_v22, %v999_v27 }
 0x2bd   :  { %1044 = vst.msk [vmem:[%s1935_s7 + $0xc0] sm:$0xff] %vm1019_vm1, %v1000_v24 }
 0x2c2   :  { %v1001_v26 = vpop.f32.mrf.mxu0 }
 0x2c3   :  { %v1002_v29 = vadd.f32 %v1752_v22, %v1001_v26 }
 0x2c5   :  { %1045 = vst.msk [vmem:[%s1935_s7 + $0xc8] sm:$0xff] %vm1019_vm1, %v1002_v29 }
 0x2ca   :  { %v1004_v32 = vpop.f32.mrf.mxu0 }
 0x2cb   :  { %v1005_v14 = vadd.f32 %v1752_v22, %v1004_v32 }
 0x2cd   :  { %1046 = vst.msk [vmem:[%s1935_s7 + $0xd0] sm:$0xff] %vm1019_vm1, %v1005_v14 }
 0x2d2   :  { %v1006_v10 = vpop.f32.mrf.mxu0 }
 0x2d3   :  { %v1007_v34 = vadd.f32 %v1752_v22, %v1006_v10 }
 0x2d5   :  { %1047 = vst.msk [vmem:[%s1935_s7 + $0xd8] sm:$0xff] %vm1019_vm1, %v1007_v34 }
 0x2da   :  { %v1009_v35 = vpop.f32.mrf.mxu0 }
 0x2db   :  { %v1010_v36 = vadd.f32 %v1752_v22, %v1009_v35 }
 0x2dd   :  { %1048 = vst.msk [vmem:[%s1935_s7 + $0xe0] sm:$0xff] %vm1019_vm1, %v1010_v36 }
 0x2e2   :  { %v1011_v20 = vpop.f32.mrf.mxu0 }
 0x2e3   :  { %v1012_v37 = vadd.f32 %v1752_v22, %v1011_v20 }
 0x2e5   :  { %1049 = vst.msk [vmem:[%s1935_s7 + $0xe8] sm:$0xff] %vm1019_vm1, %v1012_v37 }
 0x2f0   :  { %v1014_v43 = vpop.f32.mrf.mxu2 }
 0x2f1   :  { %v1015_v28 = vadd.f32 %v1752_v22, %v1014_v43 }
 0x2f3   :  { %1050 = vst.msk [vmem:[%s1935_s7 + $0xf0] sm:$0xff] %vm1019_vm1, %v1015_v28 }
 0x2f8   :  { %v1016_v39 = vpop.f32.mrf.mxu2 }
 0x2f9   :  { %v1017_v41 = vadd.f32 %v1752_v22, %v1016_v39 }
 0x2fb   :  { %1051 = vst.msk [vmem:[%s1935_s7 + $0xf8] sm:$0xff] %vm1019_vm1, %v1017_v41 }

</bundles_post_ra>
